<compile_context>
chip_gen: v6e
topology: v6e:2x2x1
jax: 0.10.0
libtpu: 0.0.40
codegen_flags: <defaults>
</compile_context>

<pallas_src>
import math
import functools

import jax
import jax.numpy as jnp
from jax import lax
from jax.experimental import pallas as pl
from jax.experimental.pallas import tpu as pltpu


def _attention_kernel(x_ref, w_ref, o_ref, *, batch, seq_len, head_size):
    # x_ref: (B*T, D), w_ref: (D, 3H) fused [Wq | Wk | Wv], o_ref: (B*T, H)
    x = x_ref[...]                                           # f32 (B*T, D)
    w = w_ref[...]                                           # f32 (D, 3H)

    # Single fused projection: one MXU push instead of three.
    qkv = jnp.dot(x, w, preferred_element_type=jnp.float32)  # (B*T, 3H)

    # Scale q (T,H) instead of scores (T,T): fewer VPU multiplies when T >> H.
    scale = 1.0 / math.sqrt(head_size)
    q = qkv[:, 0 * head_size:1 * head_size] * scale
    k = qkv[:, 1 * head_size:2 * head_size]
    v = qkv[:, 2 * head_size:3 * head_size]

    # Causal mask, hoisted out of the batch loop (shared by all batch elements).
    row = lax.broadcasted_iota(jnp.int32, (seq_len, seq_len), 0)
    col = lax.broadcasted_iota(jnp.int32, (seq_len, seq_len), 1)
    causal = col <= row

    outs = []
    # Static (trace-time unrolled) loop over the tiny batch; slices are static and
    # sublane-aligned (seq_len = 16 rows).
    for b in range(batch):
        lo = b * seq_len
        hi = lo + seq_len
        qb = q[lo:hi, :]
        kb = k[lo:hi, :]
        vb = v[lo:hi, :]

        # q @ k^T without materializing a transpose: contract last dims of both.
        scores = lax.dot_general(
            qb, kb,
            dimension_numbers=(((1,), (1,)), ((), ())),
            preferred_element_type=jnp.float32)              # (T, T)

        # Causal mask; diagonal is always unmasked so each row max is finite (no NaNs).
        scores = jnp.where(causal, scores, -jnp.inf)

        # Numerically stable softmax; the divide goes to the (otherwise idle) EUP slot.
        m = jnp.max(scores, axis=-1, keepdims=True)
        e = jnp.exp(scores - m)
        denom = jnp.sum(e, axis=-1, keepdims=True)
        weights = e * pl.reciprocal(denom, approx=True)

        # (dropout: eval-mode identity -- see TODO at top)

        outs.append(jnp.dot(weights, vb, preferred_element_type=jnp.float32))

    # One contiguous (B*T, H) store.
    o_ref[...] = jnp.concatenate(outs, axis=0).astype(o_ref.dtype)


def attention_pallas(x, wq, wk, wv):
    """x: (B, T, D); wq/wk/wv: (D, H) (i.e. nn.Linear weight transposed). Returns (B, T, H)."""
    B, T, D = x.shape
    H = wq.shape[1]

    x_flat = x.reshape(B * T, D)
    w_qkv = jnp.concatenate([wq, wk, wv], axis=1)            # (D, 3H)

    kernel = functools.partial(_attention_kernel, batch=B, seq_len=T, head_size=H)

    out_flat = pl.pallas_call(
        kernel,
        out_shape=jax.ShapeDtypeStruct((B * T, H), x.dtype),
        grid=(1,),  # single pipeline step: entire problem fits trivially in VMEM
        in_specs=[
            pl.BlockSpec((B * T, D), lambda i: (0, 0)),
            pl.BlockSpec((D, 3 * H), lambda i: (0, 0)),
        ],
        out_specs=pl.BlockSpec((B * T, H), lambda i: (0, 0)),
        compiler_params=pltpu.CompilerParams(
            dimension_semantics=("arbitrary",)
        ),
    )(x_flat, w_qkv)

    return out_flat.reshape(B, T, H)


def attention_reference(x, wq, wk, wv):
    """Pure-JAX reference mirroring the PyTorch forward (eval mode)."""
    q = x @ wq
    k = x @ wk
    v = x @ wv
    scale = 1.0 / math.sqrt(k.shape[-1])
    scores = jnp.einsum("btd,bsd->bts", q, k) * scale
    T = x.shape[1]
    tril = jnp.tril(jnp.ones((T, T), dtype=bool))
    scores = jnp.where(tril, scores, -jnp.inf)
    weights = jax.nn.softmax(scores, axis=-1)
    return weights @ v


if __name__ == "__main__":
    # Module constants: batch_size=4, context_length=16, size_token_embeddings=64.
    B = 4
    T = 16           # context_length (time steps)
    D = 64           # size_token_embeddings
    HEAD_SIZE = 16

    key = jax.random.PRNGKey(0)
    kx, kq, kk, kv = jax.random.split(key, 4)

    x = jax.random.normal(kx, (B, T, D), dtype=jnp.float32)
    # nn.Linear default init scale ~ U(-1/sqrt(D), 1/sqrt(D)); deterministic synthetic init.
    bound = 1.0 / math.sqrt(D)
    wq = jax.random.uniform(kq, (D, HEAD_SIZE), minval=-bound, maxval=bound, dtype=jnp.float32)
    wk = jax.random.uniform(kk, (D, HEAD_SIZE), minval=-bound, maxval=bound, dtype=jnp.float32)
    wv = jax.random.uniform(kv, (D, HEAD_SIZE), minval=-bound, maxval=bound, dtype=jnp.float32)

    out = attention_pallas(x, wq, wk, wv)
    out = jax.block_until_ready(out)

    ref = attention_reference(x, wq, wk, wv)
    assert out.shape == (B, T, HEAD_SIZE)
    # Tolerance accounts for the EUP approximate reciprocal in the softmax normalization.
    assert jnp.allclose(out, ref, atol=5e-3, rtol=5e-3), "mismatch vs reference"

    print("KERNEL_OK")
</pallas_src>

<mosaic_0001>
module attributes {stable_mosaic.version = 11 : i64} {
  func.func @_attention_kernel(%arg0: i32, %arg1: memref<64x64xf32, #tpu.memory_space<vmem>>, %arg2: memref<64x48xf32, #tpu.memory_space<vmem>>, %arg3: memref<64x16xf32, #tpu.memory_space<vmem>>) attributes {dimension_semantics = [#tpu.dimension_semantics<arbitrary>], iteration_bounds = array<i64: 1>, scalar_prefetch = 0 : i64, scratch_operands = 0 : i64, tpu.core_type = #tpu.core_type<tc>, window_params = [{pipeline_mode = #tpu.pipeline_mode<synchronous>, transform_indices = @transform_0, window_bounds = array<i64: 64, 64>}, {pipeline_mode = #tpu.pipeline_mode<synchronous>, transform_indices = @transform_1, window_bounds = array<i64: 64, 48>}, {pipeline_mode = #tpu.pipeline_mode<synchronous>, transform_indices = @transform_2, window_bounds = array<i64: 64, 16>}]} {
    %c0 = arith.constant 0 : index
    %c0_0 = arith.constant 0 : index
    %0 = vector.load %arg1[%c0, %c0_0] : memref<64x64xf32, #tpu.memory_space<vmem>>, vector<64x64xf32>
    %c0_1 = arith.constant 0 : index
    %c0_2 = arith.constant 0 : index
    %1 = vector.load %arg2[%c0_1, %c0_2] : memref<64x48xf32, #tpu.memory_space<vmem>>, vector<64x48xf32>
    %cst = arith.constant dense<0.000000e+00> : vector<64x48xf32>
    %2 = tpu.matmul %0, %1, %cst {dimension_numbers = #tpu.dot_dimension_numbers<[1], [0], [0], [1], [0, 0, 1, 1], [], []>} : vector<64x64xf32>, vector<64x48xf32>, vector<64x48xf32> -> vector<64x48xf32>
    %3 = vector.extract_strided_slice %2 {offsets = [0, 0], sizes = [64, 16], strides = [1, 1]} : vector<64x48xf32> to vector<64x16xf32>
    %cst_3 = arith.constant 2.500000e-01 : f32
    %4 = vector.broadcast %cst_3 : f32 to vector<64x16xf32>
    %5 = arith.mulf %3, %4 : vector<64x16xf32>
    %6 = vector.extract_strided_slice %2 {offsets = [0, 16], sizes = [64, 16], strides = [1, 1]} : vector<64x48xf32> to vector<64x16xf32>
    %7 = vector.extract_strided_slice %2 {offsets = [0, 32], sizes = [64, 16], strides = [1, 1]} : vector<64x48xf32> to vector<64x16xf32>
    %8 = tpu.iota {dimensions = array<i32: 0>} : vector<16x16xi32>
    %9 = tpu.iota {dimensions = array<i32: 1>} : vector<16x16xi32>
    %10 = arith.cmpi sle, %9, %8 : vector<16x16xi32>
    %11 = vector.extract_strided_slice %5 {offsets = [0, 0], sizes = [16, 16], strides = [1, 1]} : vector<64x16xf32> to vector<16x16xf32>
    %12 = vector.extract_strided_slice %6 {offsets = [0, 0], sizes = [16, 16], strides = [1, 1]} : vector<64x16xf32> to vector<16x16xf32>
    %13 = vector.extract_strided_slice %7 {offsets = [0, 0], sizes = [16, 16], strides = [1, 1]} : vector<64x16xf32> to vector<16x16xf32>
    %cst_4 = arith.constant dense<0.000000e+00> : vector<16x16xf32>
    %14 = tpu.matmul %11, %12, %cst_4 {dimension_numbers = #tpu.dot_dimension_numbers<[1], [1], [0], [0], [0, 0, 1, 0], [], []>} : vector<16x16xf32>, vector<16x16xf32>, vector<16x16xf32> -> vector<16x16xf32>
    %cst_5 = arith.constant 0xFF800000 : f32
    %15 = vector.broadcast %cst_5 : f32 to vector<16x16xf32>
    %16 = arith.select %10, %14, %15 : vector<16x16xi1>, vector<16x16xf32>
    %cst_6 = arith.constant dense<0xFF800000> : vector<16xf32>
    %17 = vector.multi_reduction <maximumf>, %16, %cst_6 [1] : vector<16x16xf32> to vector<16xf32>
    %18 = vector.shape_cast %17 : vector<16xf32> to vector<16x1xf32>
    %19 = vector.broadcast %18 : vector<16x1xf32> to vector<16x16xf32>
    %20 = arith.subf %16, %19 : vector<16x16xf32>
    %21 = math.exp %20 : vector<16x16xf32>
    %cst_7 = arith.constant dense<0.000000e+00> : vector<16xf32>
    %22 = vector.multi_reduction <add>, %21, %cst_7 [1] : vector<16x16xf32> to vector<16xf32>
    %23 = vector.shape_cast %22 : vector<16xf32> to vector<16x1xf32>
    %24 = tpu.reciprocal %23 {approx = true} : vector<16x1xf32> -> vector<16x1xf32>
    %25 = vector.broadcast %24 : vector<16x1xf32> to vector<16x16xf32>
    %26 = arith.mulf %21, %25 : vector<16x16xf32>
    %cst_8 = arith.constant dense<0.000000e+00> : vector<16x16xf32>
    %27 = tpu.matmul %26, %13, %cst_8 {dimension_numbers = #tpu.dot_dimension_numbers<[1], [0], [0], [1], [0, 0, 1, 1], [], []>} : vector<16x16xf32>, vector<16x16xf32>, vector<16x16xf32> -> vector<16x16xf32>
    %28 = vector.extract_strided_slice %5 {offsets = [16, 0], sizes = [16, 16], strides = [1, 1]} : vector<64x16xf32> to vector<16x16xf32>
    %29 = vector.extract_strided_slice %6 {offsets = [16, 0], sizes = [16, 16], strides = [1, 1]} : vector<64x16xf32> to vector<16x16xf32>
    %30 = vector.extract_strided_slice %7 {offsets = [16, 0], sizes = [16, 16], strides = [1, 1]} : vector<64x16xf32> to vector<16x16xf32>
    %cst_9 = arith.constant dense<0.000000e+00> : vector<16x16xf32>
    %31 = tpu.matmul %28, %29, %cst_9 {dimension_numbers = #tpu.dot_dimension_numbers<[1], [1], [0], [0], [0, 0, 1, 0], [], []>} : vector<16x16xf32>, vector<16x16xf32>, vector<16x16xf32> -> vector<16x16xf32>
    %cst_10 = arith.constant 0xFF800000 : f32
    %32 = vector.broadcast %cst_10 : f32 to vector<16x16xf32>
    %33 = arith.select %10, %31, %32 : vector<16x16xi1>, vector<16x16xf32>
    %cst_11 = arith.constant dense<0xFF800000> : vector<16xf32>
    %34 = vector.multi_reduction <maximumf>, %33, %cst_11 [1] : vector<16x16xf32> to vector<16xf32>
    %35 = vector.shape_cast %34 : vector<16xf32> to vector<16x1xf32>
    %36 = vector.broadcast %35 : vector<16x1xf32> to vector<16x16xf32>
    %37 = arith.subf %33, %36 : vector<16x16xf32>
    %38 = math.exp %37 : vector<16x16xf32>
    %cst_12 = arith.constant dense<0.000000e+00> : vector<16xf32>
    %39 = vector.multi_reduction <add>, %38, %cst_12 [1] : vector<16x16xf32> to vector<16xf32>
    %40 = vector.shape_cast %39 : vector<16xf32> to vector<16x1xf32>
    %41 = tpu.reciprocal %40 {approx = true} : vector<16x1xf32> -> vector<16x1xf32>
    %42 = vector.broadcast %41 : vector<16x1xf32> to vector<16x16xf32>
    %43 = arith.mulf %38, %42 : vector<16x16xf32>
    %cst_13 = arith.constant dense<0.000000e+00> : vector<16x16xf32>
    %44 = tpu.matmul %43, %30, %cst_13 {dimension_numbers = #tpu.dot_dimension_numbers<[1], [0], [0], [1], [0, 0, 1, 1], [], []>} : vector<16x16xf32>, vector<16x16xf32>, vector<16x16xf32> -> vector<16x16xf32>
    %45 = vector.extract_strided_slice %5 {offsets = [32, 0], sizes = [16, 16], strides = [1, 1]} : vector<64x16xf32> to vector<16x16xf32>
    %46 = vector.extract_strided_slice %6 {offsets = [32, 0], sizes = [16, 16], strides = [1, 1]} : vector<64x16xf32> to vector<16x16xf32>
    %47 = vector.extract_strided_slice %7 {offsets = [32, 0], sizes = [16, 16], strides = [1, 1]} : vector<64x16xf32> to vector<16x16xf32>
    %cst_14 = arith.constant dense<0.000000e+00> : vector<16x16xf32>
    %48 = tpu.matmul %45, %46, %cst_14 {dimension_numbers = #tpu.dot_dimension_numbers<[1], [1], [0], [0], [0, 0, 1, 0], [], []>} : vector<16x16xf32>, vector<16x16xf32>, vector<16x16xf32> -> vector<16x16xf32>
    %cst_15 = arith.constant 0xFF800000 : f32
    %49 = vector.broadcast %cst_15 : f32 to vector<16x16xf32>
    %50 = arith.select %10, %48, %49 : vector<16x16xi1>, vector<16x16xf32>
    %cst_16 = arith.constant dense<0xFF800000> : vector<16xf32>
    %51 = vector.multi_reduction <maximumf>, %50, %cst_16 [1] : vector<16x16xf32> to vector<16xf32>
    %52 = vector.shape_cast %51 : vector<16xf32> to vector<16x1xf32>
    %53 = vector.broadcast %52 : vector<16x1xf32> to vector<16x16xf32>
    %54 = arith.subf %50, %53 : vector<16x16xf32>
    %55 = math.exp %54 : vector<16x16xf32>
    %cst_17 = arith.constant dense<0.000000e+00> : vector<16xf32>
    %56 = vector.multi_reduction <add>, %55, %cst_17 [1] : vector<16x16xf32> to vector<16xf32>
    %57 = vector.shape_cast %56 : vector<16xf32> to vector<16x1xf32>
    %58 = tpu.reciprocal %57 {approx = true} : vector<16x1xf32> -> vector<16x1xf32>
    %59 = vector.broadcast %58 : vector<16x1xf32> to vector<16x16xf32>
    %60 = arith.mulf %55, %59 : vector<16x16xf32>
    %cst_18 = arith.constant dense<0.000000e+00> : vector<16x16xf32>
    %61 = tpu.matmul %60, %47, %cst_18 {dimension_numbers = #tpu.dot_dimension_numbers<[1], [0], [0], [1], [0, 0, 1, 1], [], []>} : vector<16x16xf32>, vector<16x16xf32>, vector<16x16xf32> -> vector<16x16xf32>
    %62 = vector.extract_strided_slice %5 {offsets = [48, 0], sizes = [16, 16], strides = [1, 1]} : vector<64x16xf32> to vector<16x16xf32>
    %63 = vector.extract_strided_slice %6 {offsets = [48, 0], sizes = [16, 16], strides = [1, 1]} : vector<64x16xf32> to vector<16x16xf32>
    %64 = vector.extract_strided_slice %7 {offsets = [48, 0], sizes = [16, 16], strides = [1, 1]} : vector<64x16xf32> to vector<16x16xf32>
    %cst_19 = arith.constant dense<0.000000e+00> : vector<16x16xf32>
    %65 = tpu.matmul %62, %63, %cst_19 {dimension_numbers = #tpu.dot_dimension_numbers<[1], [1], [0], [0], [0, 0, 1, 0], [], []>} : vector<16x16xf32>, vector<16x16xf32>, vector<16x16xf32> -> vector<16x16xf32>
    %cst_20 = arith.constant 0xFF800000 : f32
    %66 = vector.broadcast %cst_20 : f32 to vector<16x16xf32>
    %67 = arith.select %10, %65, %66 : vector<16x16xi1>, vector<16x16xf32>
    %cst_21 = arith.constant dense<0xFF800000> : vector<16xf32>
    %68 = vector.multi_reduction <maximumf>, %67, %cst_21 [1] : vector<16x16xf32> to vector<16xf32>
    %69 = vector.shape_cast %68 : vector<16xf32> to vector<16x1xf32>
    %70 = vector.broadcast %69 : vector<16x1xf32> to vector<16x16xf32>
    %71 = arith.subf %67, %70 : vector<16x16xf32>
    %72 = math.exp %71 : vector<16x16xf32>
    %cst_22 = arith.constant dense<0.000000e+00> : vector<16xf32>
    %73 = vector.multi_reduction <add>, %72, %cst_22 [1] : vector<16x16xf32> to vector<16xf32>
    %74 = vector.shape_cast %73 : vector<16xf32> to vector<16x1xf32>
    %75 = tpu.reciprocal %74 {approx = true} : vector<16x1xf32> -> vector<16x1xf32>
    %76 = vector.broadcast %75 : vector<16x1xf32> to vector<16x16xf32>
    %77 = arith.mulf %72, %76 : vector<16x16xf32>
    %cst_23 = arith.constant dense<0.000000e+00> : vector<16x16xf32>
    %78 = tpu.matmul %77, %64, %cst_23 {dimension_numbers = #tpu.dot_dimension_numbers<[1], [0], [0], [1], [0, 0, 1, 1], [], []>} : vector<16x16xf32>, vector<16x16xf32>, vector<16x16xf32> -> vector<16x16xf32>
    %79 = tpu.concatenate %27, %44, %61, %78 in 0 : vector<16x16xf32>, vector<16x16xf32>, vector<16x16xf32>, vector<16x16xf32> -> vector<64x16xf32>
    %c0_24 = arith.constant 0 : index
    %c0_25 = arith.constant 0 : index
    %80 = vector.load %arg3[%c0_24, %c0_25] : memref<64x16xf32, #tpu.memory_space<vmem>>, vector<64x16xf32>
    tpu.vector_store %arg3[%c0_24, %c0_25], %79 {strides = array<i32>} : memref<64x16xf32, #tpu.memory_space<vmem>>, vector<64x16xf32>,
    return
  }
  func.func @transform_0(%arg0: i32) -> (i32, i32) {
    %c0_i32 = arith.constant 0 : i32
    %c0_i32_0 = arith.constant 0 : i32
    %c0_i32_1 = arith.constant 0 : i32
    return %c0_i32, %c0_i32_0 : i32, i32
  }
  func.func @transform_1(%arg0: i32) -> (i32, i32) {
    %c0_i32 = arith.constant 0 : i32
    %c0_i32_0 = arith.constant 0 : i32
    %c0_i32_1 = arith.constant 0 : i32
    return %c0_i32, %c0_i32_0 : i32, i32
  }
  func.func @transform_2(%arg0: i32) -> (i32, i32) {
    %c0_i32 = arith.constant 0 : i32
    %c0_i32_0 = arith.constant 0 : i32
    %c0_i32_1 = arith.constant 0 : i32
    return %c0_i32, %c0_i32_0 : i32, i32
  }
}

</mosaic_0001>

<bundles_post_ra>
// kernel: tpu_custom_call.1
= control target key start
LH: loop header
LB: loop body
LE: loop exit
PB: predicated region body
PF: predicated region fallthrough
CT: control target
= control target key end

     0   :  { %vm27_vm0 = vcmask 523264   ;;  %vm178_vm1 = vcmask 130048   ;;  %v165_v20 = vlaneseq  ;;  %s1425_s1 = inlined_call_operand.vmem [shape: f32[64,48], index: 1, kind: input, shape index: {}]   ;;  %s1426_s0 = inlined_call_operand.vmem [shape: f32[64,64], index: 0, kind: input, shape index: {}]   ;;  %s1427_s2 = inlined_call_operand.vmem [shape: f32[64,16], index: 2, kind: output, shape index: {}]  }
   0x1   :  { %v26_v0 = vld [vmem:[%s1425_s1 + $0x38] sm:$0xff]  ;;  %v25_v1 = vld [vmem:[%s1425_s1 + $0x30] sm:$0xff]  ;;  %v24_v2 = vld [vmem:[%s1425_s1 + $0x28] sm:$0xff] }
   0x2   :  { %1073 = vmatprep.subr.mxu0 %v26_v0  ;;  %v11_v3 = vld [vmem:[%s1426_s0] sm:$0xff]  ;;  %v22_v5 = vld [vmem:[%s1425_s1 + $0x18] sm:$0xff]  ;;  %v21_v6 = vld [vmem:[%s1425_s1 + $0x10] sm:$0xff]  ;;  %v1264_v21 = vshrl.u32 %v165_v20, 7  ;;  %v1269_v23 = vand.u32 127, %v165_v20 }
   0x3   :  { %1074 = vmatpush3.msra.mxu0 %v26_v0  ;;  %1089 = vmatprep.mubr.msk.f32.mxu0 %vm27_vm0, %v11_v3  ;;  %v23_v4 = vld [vmem:[%s1425_s1 + $0x20] sm:$0xff]  ;;  %v20_v7 = vld [vmem:[%s1425_s1 + $0x8] sm:$0xff]  ;;  %v13_v10 = vld [vmem:[%s1426_s0 + $0x10] sm:$0xff] }
   0x4   :  { %1075 = vmatprep.subr.mxu0 %v25_v1  ;;  %v19_v8 = vld [vmem:[%s1425_s1] sm:$0xff]  ;;  %v12_v9 = vld [vmem:[%s1426_s0 + $0x8] sm:$0xff]  ;;  %v14_v11 = vld [vmem:[%s1426_s0 + $0x18] sm:$0xff]  ;;  %s1191_s1 = smov 112   ;;  %v1267_v22 = vadd.s32 8, %v1264_v21  ;;  %vm170_vm2 = vcmp.le.s32.totalorder %v1269_v23, %v1264_v21 }
   0x5   :  { %1076 = vmatpush3.msra.mxu0 %v25_v1  ;;  %v15_v18 = vld [vmem:[%s1426_s0 + $0x20] sm:$0xff]  ;;  %v16_v19 = vld [vmem:[%s1426_s0 + $0x28] sm:$0xff]  ;;  %v17_v32 = vld [vmem:[%s1426_s0 + $0x30] sm:$0xff] }
   0x6   :  { %1077 = vmatprep.subr.mxu0 %v24_v2  ;;  %vm171_vm3 = vcmp.le.s32.totalorder %v1269_v23, %v1267_v22  ;;  %v18_v34 = vld [vmem:[%s1426_s0 + $0x38] sm:$0xff]  ;;  %s1192_s0 = smov 96  }
   0x7   :  { %1078 = vmatpush3.msra.mxu0 %v24_v2 }
   0x8   :  { %1079 = vmatprep.subr.mxu0 %v23_v4 }
   0x9   :  { %1080 = vmatpush3.msra.mxu0 %v23_v4 }
   0xa   :  { %1081 = vmatprep.subr.mxu0 %v22_v5 }
   0xb   :  { %1082 = vmatpush3.msra.mxu0 %v22_v5 }
   0xc   :  { %1083 = vmatprep.subr.mxu0 %v21_v6 }
   0xd   :  { %1084 = vmatpush3.msra.mxu0 %v21_v6 }
   0xe   :  { %1085 = vmatprep.subr.mxu0 %v20_v7 }
   0xf   :  { %1086 = vmatpush3.msra.mxu0 %v20_v7 }
  0x10   :  { %1087 = vmatprep.subr.mxu0 %v19_v8 }
  0x11   :  { %1088 = vmatpush3.msra.mxu0 %v19_v8 }
  0x12   :  { %1090 = vmatmul.mubr.msk.f32.vlgmr.msra.gmra.mxu0 %vm27_vm0, %v12_v9 }
  0x13   :  { %1092 = vmatprep.mubr.msk.f32.mxu0 %vm27_vm0, %v13_v10 }
  0x16   :  { %1093 = vmatmul.mubr.msk.f32.gmra.mxu0 %vm27_vm0, %v14_v11 }
  0x17   :  { %1095 = vmatprep.mubr.msk.f32.mxu0 %vm27_vm0, %v15_v18 }
  0x1a   :  { %1096 = vmatmul.mubr.msk.f32.gmra.mxu0 %vm27_vm0, %v16_v19 }
  0x1b   :  { %1098 = vmatprep.mubr.msk.f32.mxu0 %vm27_vm0, %v17_v32 }
  0x1e   :  { %1099 = vmatmul.mubr.msk.f32.gmra.mxu0 %vm27_vm0, %v18_v34 }
  0xd2   :  { %v1091_v12 = vpop.f32.mrf.mxu0 }
  0xd3   :  { %176 = vrot.lane.b32.xlu0 %v1091_v12, %s1191_s1  ;;  %v158_v17 = vmul.f32 0.25, %v1091_v12 }
  0xd4   :  { %v118_v13 = vpop.f32.mrf.mxu0 }
  0xd5   :  { %v157_v14 = vmul.f32 0.25, %v118_v13 }
  0xd6   :  { %v1283_v30 = vpop.f32.mrf.mxu0 }
  0xd7   :  { %174 = vrot.lane.b32.xlu0 %v118_v13, %s1191_s1  ;;  %1105 = vmatprep.mubr.msk.f32.mxu1 %vm178_vm1, %v157_v14  ;;  %v160_v60 = vmul.f32 0.25, %v1283_v30 }
  0xd8   :  { %v1285_v31 = vpop.f32.mrf.mxu0 }
  0xd9   :  { %v159_v57 = vmul.f32 0.25, %v1285_v31 }
  0xda   :  { %v1291_v33 = vpop.f32.mrf.mxu0 }
  0xdb   :  { %v162_v61 = vmul.f32 0.25, %v1291_v33 }
  0xdc   :  { %v1296_v35 = vpop.f32.mrf.mxu0 }
  0xdd   :  { %v161_v36 = vmul.f32 0.25, %v1296_v35 }
  0xde   :  { %v1329_v63 = vpop.f32.mrf.mxu0 }
  0xdf   :  { %1133 = vmatprep.mubr.msk.f32.mxu0 %vm178_vm1, %v161_v36 }
  0xe0   :  { %v1339_v1 = vpop.f32.mrf.mxu0 }
 0x145   :  { %v177_v15 = vpop.permute.xlu0 %176 }
 0x146   :  { %1101 = vmatprep.subr.msk.mxu1 %vm178_vm1, %v177_v15 }
 0x147   :  { %1102 = vmatpush3.xpose.msk.msra.mxu1 %vm178_vm1, %v177_v15 }
 0x149   :  { %v175_v16 = vpop.permute.xlu0 %174 }
 0x14a   :  { %1103 = vmatprep.subr.msk.mxu1 %vm178_vm1, %v175_v16 }
 0x14b   :  { %1104 = vmatpush3.xpose.msk.msra.mxu1 %vm178_vm1, %v175_v16 }
 0x14e   :  { %1106 = vmatmul.mubr.msk.f32.vlgmr.msra.gmra.mxu1 %vm178_vm1, %v158_v17 }
 0x20e   :  { %v1107_v24 = vpop.f32.mrf.mxu1 }
 0x20f   :  { %v265_v28 = vsel %vm171_vm3, %v1107_v24, -inf }
 0x210   :  { %v255_v25 = vpop.f32.mrf.mxu1  ;;  %v269_v29 = vsel %vm178_vm1, %v265_v28, -inf }
 0x211   :  { %v264_v26 = vsel %vm170_vm2, %v255_v25, -inf }
 0x212   :  { %v266_v27 = vsel %vm178_vm1, %v264_v26, -inf }
 0x213   :  { %267 = vmax.xlane.f32.xlu1 %v266_v27 }
 0x217   :  { %270 = vmax.xlane.f32.xlu1 %v269_v29 }
 0x29c   :  { %v268_v37 = vpop.xlane.xlu1 %267 }
 0x29d   :  { %v272_v38 = vsub.f32 %v264_v26, %v268_v37 }
 0x29f   :  { %v274_v39 = vmul.f32 1.442695, %v272_v38 }
 0x2a0   :  { %v271_v40 = vpop.xlane.xlu1 %270 }
 0x2a1   :  { %1159 = vpow2.f32 %v274_v39  ;;  %v273_v41 = vsub.f32 %v265_v28, %v271_v40 }
 0x2a3   :  { %v276_v42 = vmul.f32 1.442695, %v273_v41 }
 0x2a5   :  { %1161 = vpow2.f32 %v276_v42 }
 0x2ae   :  { %v1160_v43 = vpop.eup %1159 }
 0x2af   :  { %v278_v44 = vsel %vm178_vm1, %v1160_v43, 0.0 }
 0x2b0   :  { %279 = vadd.xlane.f32.xlu0 %v278_v44 }
 0x2b2   :  { %v1162_v45 = vpop.eup %1161 }
 0x2b3   :  { %v281_v46 = vsel %vm178_vm1, %v1162_v45, 0.0 }
 0x2b4   :  { %282 = vadd.xlane.f32.xlu1 %v281_v46 }
 0x2c5   :  { %290 = vrot.lane.b32.xlu1 %v1091_v12, %s1192_s0 }
 0x2c6   :  { %581 = vrot.lane.b32.xlu0 %v1291_v33, %s1191_s1 }
 0x2c9   :  { %288 = vrot.lane.b32.xlu1 %v118_v13, %s1192_s0 }
 0x2cd   :  { %379 = vrot.lane.b32.xlu1 %v1283_v30, %s1191_s1 }
 0x2d1   :  { %377 = vrot.lane.b32.xlu1 %v1285_v31, %s1191_s1 }
 0x2d5   :  { %579 = vrot.lane.b32.xlu1 %v1296_v35, %s1191_s1 }
 0x339   :  { %v280_v47 = vpop.xlane.xlu0 %279 }
 0x33a   :  { %1163 = vrcp.f32 %v280_v47 }
 0x33d   :  { %v283_v48 = vpop.xlane.xlu1 %282  ;;  %v582_v49 = vpop.permute.xlu0 %581 }
 0x33e   :  { %1165 = vrcp.f32 %v283_v48  ;;  %1129 = vmatprep.subr.msk.mxu0 %vm178_vm1, %v582_v49 }
 0x33f   :  { %1130 = vmatpush3.xpose.msk.msra.mxu0 %vm178_vm1, %v582_v49 }
 0x341   :  { %v291_v50 = vpop.permute.xlu1 %290 }
 0x342   :  { %1108 = vmatprep.subr.mxu1 %v291_v50 }
 0x343   :  { %1109 = vmatpush3.msra.mxu1 %v291_v50 }
 0x345   :  { %v289_v51 = vpop.permute.xlu1 %288 }
 0x346   :  { %1110 = vmatprep.subr.mxu1 %v289_v51 }
 0x347   :  { %v1164_v52 = vpop.eup %1163  ;;  %1111 = vmatpush3.msra.mxu1 %v289_v51 }
 0x348   :  { %v286_v53 = vmul.f32 %v1164_v52, %v1160_v43 }
 0x349   :  { %v380_v54 = vpop.permute.xlu1 %379 }
 0x34a   :  { %1112 = vmatprep.mubr.msk.f32.mxu1 %vm178_vm1, %v286_v53  ;;  %1115 = vmatprep.subr.msk.mxu1 %vm178_vm1, %v380_v54  ;;  %v163_v53 = vmul.f32 0.25, %v1339_v1 }
 0x34b   :  { %v1166_v55 = vpop.eup %1165 }
 0x34c   :  { %v287_v56 = vmul.f32 %v1166_v55, %v1162_v45 }
 0x34d   :  { %v378_v58 = vpop.permute.xlu1 %377 }
 0x34e   :  { %1113 = vmatmul.mubr.msk.f32.vlgmr.msra.gmra.mxu1 %vm178_vm1, %v287_v56  ;;  %v164_v56 = vmul.f32 0.25, %v1329_v63 }
 0x34f   :  { %1116 = vmatpush3.xpose.msk.msra.mxu1 %vm178_vm1, %v380_v54  ;;  %1119 = vmatprep.mubr.msk.f32.mxu1 %vm178_vm1, %v159_v57 }
 0x350   :  { %1117 = vmatprep.subr.msk.mxu1 %vm178_vm1, %v378_v58 }
 0x351   :  { %v580_v59 = vpop.permute.xlu1 %579 }
 0x352   :  { %1131 = vmatprep.subr.msk.mxu0 %vm178_vm1, %v580_v59 }
 0x353   :  { %1118 = vmatpush3.xpose.msk.msra.mxu1 %vm178_vm1, %v378_v58  ;;  %1132 = vmatpush3.xpose.msk.msra.mxu0 %vm178_vm1, %v580_v59 }
 0x356   :  { %1120 = vmatmul.mubr.msk.f32.vlgmr.msra.gmra.mxu1 %vm178_vm1, %v160_v60  ;;  %1134 = vmatmul.mubr.msk.f32.vlgmr.msra.gmra.mxu0 %vm178_vm1, %v162_v61 }
 0x40e   :  { %v1114_v62 = vpop.f32.mrf.mxu1 }
 0x40f   :  { %982 = vst.msk [vmem:[%s1427_s2 + $0x8] sm:$0xff] %vm178_vm1, %v1114_v62 }
 0x410   :  { %v366_v0 = vpop.f32.mrf.mxu1 }
 0x411   :  { %981 = vst.msk [vmem:[%s1427_s2] sm:$0xff] %vm178_vm1, %v366_v0 }
 0x416   :  { %v1121_v2 = vpop.f32.mrf.mxu1  ;;  %v1135_v3 = vpop.f32.mrf.mxu0 }
 0x417   :  { %v467_v4 = vsel %vm171_vm3, %v1121_v2, -inf  ;;  %v669_v12 = vsel %vm171_vm3, %v1135_v3, -inf }
 0x418   :  { %v457_v5 = vpop.f32.mrf.mxu1  ;;  %v471_v6 = vsel %vm178_vm1, %v467_v4, -inf  ;;  %v659_v7 = vpop.f32.mrf.mxu0  ;;  %v673_v13 = vsel %vm178_vm1, %v669_v12, -inf }
 0x419   :  { %v466_v8 = vsel %vm170_vm2, %v457_v5, -inf  ;;  %472 = vmax.xlane.f32.xlu0 %v471_v6  ;;  %v668_v10 = vsel %vm170_vm2, %v659_v7, -inf }
 0x41a   :  { %v468_v9 = vsel %vm178_vm1, %v466_v8, -inf  ;;  %v670_v11 = vsel %vm178_vm1, %v668_v10, -inf }
 0x41b   :  { %469 = vmax.xlane.f32.xlu1 %v468_v9 }
 0x41f   :  { %671 = vmax.xlane.f32.xlu1 %v670_v11 }
 0x423   :  { %674 = vmax.xlane.f32.xlu1 %v673_v13 }
 0x4a2   :  { %v473_v28 = vpop.xlane.xlu0 %472 }
 0x4a3   :  { %v475_v29 = vsub.f32 %v467_v4, %v473_v28 }
 0x4a4   :  { %v470_v14 = vpop.xlane.xlu1 %469 }
 0x4a5   :  { %v478_v32 = vmul.f32 1.442695, %v475_v29  ;;  %v474_v34 = vsub.f32 %v466_v8, %v470_v14 }
 0x4a7   :  { %v476_v36 = vmul.f32 1.442695, %v474_v34 }
 0x4a8   :  { %v672_v15 = vpop.xlane.xlu1 %671 }
 0x4a9   :  { %v676_v16 = vsub.f32 %v668_v10, %v672_v15 }
 0x4ab   :  { %v678_v17 = vmul.f32 1.442695, %v676_v16 }
 0x4ac   :  { %v675_v18 = vpop.xlane.xlu1 %674 }
 0x4ad   :  { %1167 = vpow2.f32 %v678_v17  ;;  %v677_v19 = vsub.f32 %v669_v12, %v675_v18 }
 0x4af   :  { %v680_v20 = vmul.f32 1.442695, %v677_v19 }
 0x4b1   :  { %1169 = vpow2.f32 %v680_v20 }
 0x4b2   :  { %1171 = vpow2.f32 %v478_v32 }
 0x4b3   :  { %1173 = vpow2.f32 %v476_v36 }
 0x4ba   :  { %v1168_v24 = vpop.eup %1167 }
 0x4bb   :  { %v682_v25 = vsel %vm178_vm1, %v1168_v24, 0.0 }
 0x4bc   :  { %683 = vadd.xlane.f32.xlu1 %v682_v25 }
 0x4be   :  { %v1170_v26 = vpop.eup %1169 }
 0x4bf   :  { %v685_v27 = vsel %vm178_vm1, %v1170_v26, 0.0  ;;  %v1172_v37 = vpop.eup %1171 }
 0x4c0   :  { %686 = vadd.xlane.f32.xlu0 %v685_v27  ;;  %v483_v38 = vsel %vm178_vm1, %v1172_v37, 0.0 }
 0x4cd   :  { %492 = vrot.lane.b32.xlu1 %v1283_v30, %s1192_s0  ;;  %v1174_v30 = vpop.eup %1173 }
 0x4d1   :  { %694 = vrot.lane.b32.xlu1 %v1291_v33, %s1192_s0  ;;  %v480_v33 = vsel %vm178_vm1, %v1174_v30, 0.0 }
 0x4d5   :  { %692 = vrot.lane.b32.xlu1 %v1296_v35, %s1192_s0 }
 0x4d6   :  { %490 = vrot.lane.b32.xlu0 %v1285_v31, %s1192_s0 }
 0x4f5   :  { %484 = vadd.xlane.f32.xlu0 %v483_v38 }
 0x4f9   :  { %481 = vadd.xlane.f32.xlu1 %v480_v33 }
 0x50a   :  { %781 = vrot.lane.b32.xlu1 %v1339_v1, %s1191_s1 }
 0x50b   :  { %783 = vrot.lane.b32.xlu0 %v1329_v63, %s1191_s1 }
 0x545   :  { %v684_v31 = vpop.xlane.xlu1 %683 }
 0x546   :  { %1175 = vrcp.f32 %v684_v31 }
 0x549   :  { %v687_v35 = vpop.xlane.xlu0 %686  ;;  %v493_v39 = vpop.permute.xlu1 %492 }
 0x54a   :  { %1122 = vmatprep.subr.mxu1 %v493_v39 }
 0x54b   :  { %1123 = vmatpush3.msra.mxu1 %v493_v39 }
 0x54d   :  { %v491_v40 = vpop.permute.xlu0 %490  ;;  %v695_v41 = vpop.permute.xlu1 %694 }
 0x54e   :  { %1124 = vmatprep.subr.mxu1 %v491_v40 }
 0x54f   :  { %1125 = vmatpush3.msra.mxu1 %v491_v40 }
 0x550   :  { %1136 = vmatprep.subr.mxu1 %v695_v41 }
 0x551   :  { %v693_v42 = vpop.permute.xlu1 %692 }
 0x553   :  { %v1176_v45 = vpop.eup %1175 }
 0x554   :  { %v690_v51 = vmul.f32 %v1176_v45, %v1168_v24 }
 0x57e   :  { %v485_v43 = vpop.xlane.xlu0 %484 }
 0x57f   :  { %1177 = vrcp.f32 %v485_v43 }
 0x582   :  { %v482_v44 = vpop.xlane.xlu1 %481  ;;  %v784_v54 = vpop.permute.xlu0 %783 }
 0x583   :  { %1179 = vrcp.f32 %v482_v44 }
 0x584   :  { %1181 = vrcp.f32 %v687_v35 }
 0x586   :  { %v782_v55 = vpop.permute.xlu1 %781 }
 0x58c   :  { %v1178_v46 = vpop.eup %1177 }
 0x58d   :  { %v489_v49 = vmul.f32 %v1178_v46, %v1172_v37 }
 0x590   :  { %v1180_v47 = vpop.eup %1179 }
 0x591   :  { %v488_v48 = vmul.f32 %v1180_v47, %v1174_v30  ;;  %v1182_v50 = vpop.eup %1181 }
 0x592   :  { %v691_v52 = vmul.f32 %v1182_v50, %v1170_v26 }
 0x593   :  { %1126 = vmatprep.mubr.msk.f32.mxu1 %vm178_vm1, %v488_v48 }
 0x594   :  { %1127 = vmatmul.mubr.msk.f32.vlgmr.msra.gmra.mxu1 %vm178_vm1, %v489_v49 }
 0x595   :  { %1137 = vmatpush3.msra.mxu1 %v695_v41  ;;  %1140 = vmatprep.mubr.msk.f32.mxu1 %vm178_vm1, %v690_v51 }
 0x596   :  { %1138 = vmatprep.subr.mxu1 %v693_v42 }
 0x597   :  { %1139 = vmatpush3.msra.mxu1 %v693_v42 }
 0x598   :  { %1143 = vmatprep.subr.msk.mxu1 %vm178_vm1, %v784_v54  ;;  %1141 = vmatmul.mubr.msk.f32.vlgmr.msra.gmra.mxu1 %vm178_vm1, %v691_v52 }
 0x599   :  { %1144 = vmatpush3.xpose.msk.msra.mxu1 %vm178_vm1, %v784_v54  ;;  %1147 = vmatprep.mubr.msk.f32.mxu1 %vm178_vm1, %v163_v53 }
 0x59a   :  { %1145 = vmatprep.subr.msk.mxu1 %vm178_vm1, %v782_v55 }
 0x59d   :  { %1146 = vmatpush3.xpose.msk.msra.mxu1 %vm178_vm1, %v782_v55 }
 0x5a0   :  { %1148 = vmatmul.mubr.msk.f32.vlgmr.msra.gmra.mxu1 %vm178_vm1, %v164_v56 }
 0x654   :  { %v1128_v57 = vpop.f32.mrf.mxu1 }
 0x655   :  { %984 = vst.msk [vmem:[%s1427_s2 + $0x18] sm:$0xff] %vm178_vm1, %v1128_v57 }
 0x656   :  { %v568_v58 = vpop.f32.mrf.mxu1 }
 0x657   :  { %983 = vst.msk [vmem:[%s1427_s2 + $0x10] sm:$0xff] %vm178_vm1, %v568_v58 }
 0x658   :  { %v1142_v59 = vpop.f32.mrf.mxu1 }
 0x659   :  { %986 = vst.msk [vmem:[%s1427_s2 + $0x28] sm:$0xff] %vm178_vm1, %v1142_v59 }
 0x65a   :  { %v770_v60 = vpop.f32.mrf.mxu1 }
 0x65b   :  { %985 = vst.msk [vmem:[%s1427_s2 + $0x20] sm:$0xff] %vm178_vm1, %v770_v60 }
 0x660   :  { %v1149_v61 = vpop.f32.mrf.mxu1 }
 0x661   :  { %v871_v62 = vsel %vm171_vm3, %v1149_v61, -inf }
 0x662   :  { %v861_v0 = vpop.f32.mrf.mxu1  ;;  %v875_v2 = vsel %vm178_vm1, %v871_v62, -inf }
 0x663   :  { %v870_v3 = vsel %vm170_vm2, %v861_v0, -inf  ;;  %876 = vmax.xlane.f32.xlu1 %v875_v2 }
 0x664   :  { %v872_v4 = vsel %vm178_vm1, %v870_v3, -inf }
 0x665   :  { %873 = vmax.xlane.f32.xlu0 %v872_v4 }
 0x674   :  { %896 = vrot.lane.b32.xlu1 %v1329_v63, %s1192_s0 }
 0x6ec   :  { %v877_v5 = vpop.xlane.xlu1 %876 }
 0x6ed   :  { %v879_v6 = vsub.f32 %v871_v62, %v877_v5 }
 0x6ee   :  { %v874_v7 = vpop.xlane.xlu0 %873 }
 0x6ef   :  { %v882_v8 = vmul.f32 1.442695, %v879_v6  ;;  %v878_v22 = vsub.f32 %v870_v3, %v874_v7 }
 0x6f0   :  { %v897_v9 = vpop.permute.xlu1 %896 }
 0x6f1   :  { %1183 = vpow2.f32 %v882_v8  ;;  %v880_v10 = vmul.f32 1.442695, %v878_v22  ;;  %1150 = vmatprep.subr.mxu0 %v897_v9 }
 0x6f2   :  { %1151 = vmatpush3.msra.mxu0 %v897_v9 }
 0x6f3   :  { %1185 = vpow2.f32 %v880_v10 }
 0x6fe   :  { %v1184_v21 = vpop.eup %1183 }
 0x6ff   :  { %v887_v23 = vsel %vm178_vm1, %v1184_v21, 0.0 }
 0x700   :  { %v1186_v11 = vpop.eup %1185  ;;  %888 = vadd.xlane.f32.xlu0 %v887_v23 }
 0x701   :  { %v884_v12 = vsel %vm178_vm1, %v1186_v11, 0.0 }
 0x704   :  { %885 = vadd.xlane.f32.xlu0 %v884_v12 }
 0x71a   :  { %894 = vrot.lane.b32.xlu0 %v1339_v1, %s1192_s0 }
 0x789   :  { %v889_v63 = vpop.xlane.xlu0 %888 }
 0x78a   :  { %1187 = vrcp.f32 %v889_v63 }
 0x78d   :  { %v886_v13 = vpop.xlane.xlu0 %885 }
 0x78e   :  { %1189 = vrcp.f32 %v886_v13 }
 0x791   :  { %v895_v14 = vpop.permute.xlu0 %894 }
 0x792   :  { %1152 = vmatprep.subr.mxu0 %v895_v14 }
 0x793   :  { %1153 = vmatpush3.msra.mxu0 %v895_v14 }
 0x797   :  { %v1188_v15 = vpop.eup %1187 }
 0x798   :  { %v893_v18 = vmul.f32 %v1188_v15, %v1184_v21 }
 0x79b   :  { %v1190_v16 = vpop.eup %1189 }
 0x79c   :  { %v892_v17 = vmul.f32 %v1190_v16, %v1186_v11 }
 0x79e   :  { %1154 = vmatprep.mubr.msk.f32.mxu0 %vm178_vm1, %v892_v17 }
 0x79f   :  { %1155 = vmatmul.mubr.msk.f32.vlgmr.msra.gmra.mxu0 %vm178_vm1, %v893_v18 }
 0x85f   :  { %v1156_v19 = vpop.f32.mrf.mxu0 }
 0x860   :  { %988 = vst.msk [vmem:[%s1427_s2 + $0x38] sm:$0xff] %vm178_vm1, %v1156_v19 }
 0x861   :  { %v972_v1 = vpop.f32.mrf.mxu0 }
 0x862   :  { %987 = vst.msk [vmem:[%s1427_s2 + $0x30] sm:$0xff] %vm178_vm1, %v972_v1 }

</bundles_post_ra>
